<compile_context>
chip_gen: v5e
topology: v5e:2x2
jax: 0.10.0
libtpu: 0.0.40
codegen_flags: <defaults>
</compile_context>

<pallas_src>
import jax
import jax.numpy as jnp
from jax import lax
from jax.experimental import pallas as pl
from jax.experimental.pallas import tpu as pltpu


# ----------------------------- tiling helpers ------------------------------ #
def _pick_tile(dim, pref, align):
    """Largest multiple of `align` that is <= `pref` and evenly divides `dim`.
    Falls back to the full dimension (a block dim equal to the array dim is
    always legal) when `dim` itself is not `align`-aligned."""
    if dim <= align or dim % align != 0:
        return dim
    t = min(pref, dim)
    t -= t % align
    while t >= align and dim % t != 0:
        t -= align
    return t if t >= align else dim


def _vmem_limit(est_bytes):
    # Headroom for double buffering; stay under v7x's 64 MiB physical VMEM.
    return int(min(64 * 1024 * 1024, max(32 * 1024 * 1024, 2 * est_bytes)))


# ------------------------- per-layer tiled kernel --------------------------- #
def _linear_tiled_kernel(x_ref, w_ref, b_ref, o_ref, acc_ref):
    """grid = (M_tiles, N_tiles, K_tiles); K innermost (reduction axis last)."""
    k = pl.program_id(2)

    @pl.when(k == 0)
    def _():
        acc_ref[...] = jnp.zeros_like(acc_ref)

    # x: (tm, tk), w: (tn, tk)  [PyTorch Linear layout W = (H_out, H_in)].
    # Contract the last axis of both -> (tm, tn); maps straight onto the MXU,
    # no in-kernel transpose.
    acc_ref[...] += lax.dot_general(
        x_ref[...], w_ref[...],
        dimension_numbers=(((1,), (1,)), ((), ())),
        preferred_element_type=jnp.float32)

    @pl.when(k == pl.num_programs(2) - 1)
    def _():
        # Bias added exactly once, in f32, in the finalize branch; single
        # lane-dense store of the output tile.
        o_ref[...] = (acc_ref[...] + b_ref[...]).astype(o_ref.dtype)


def linear_pallas(x, w, b, *, tm=256, tn=256, tk=512,
                  compute_dtype=None, out_dtype=None):
    """y = x @ w.T + b (PyTorch nn.Linear semantics) via a tiled Pallas kernel."""
    S, H_in = x.shape
    H_out, H_in2 = w.shape
    assert H_in2 == H_in
    out_dtype = out_dtype or x.dtype

    if compute_dtype is not None:
        x = x.astype(compute_dtype)          # cast hoisted out of the kernel
        w = w.astype(compute_dtype)
    b2 = b.reshape(1, H_out).astype(jnp.float32)

    tm = _pick_tile(S, tm, 8)
    tn = _pick_tile(H_out, tn, 128)
    tk = _pick_tile(H_in, tk, 128)
    grid = (S // tm, H_out // tn, H_in // tk)

    isz = jnp.dtype(x.dtype).itemsize
    osz = jnp.dtype(out_dtype).itemsize
    cost = pl.CostEstimate(
        flops=int(2 * S * H_out * H_in),
        transcendentals=0,
        bytes_accessed=int(S * H_in * isz + H_out * H_in * isz
                           + H_out * 4 + S * H_out * osz))
    vmem_est = (2 * (tm * tk + tn * tk) * isz      # double-buffered x / w tiles
                + 2 * tm * tn * osz                # double-buffered output tile
                + tm * tn * 4 + 2 * tn * 4)        # f32 accumulator + bias

    return pl.pallas_call(
        _linear_tiled_kernel,
        out_shape=jax.ShapeDtypeStruct((S, H_out), out_dtype),
        grid_spec=pltpu.PrefetchScalarGridSpec(
            num_scalar_prefetch=0,
            grid=grid,
            in_specs=[
                pl.BlockSpec((tm, tk), lambda i, j, k: (i, k)),
                pl.BlockSpec((tn, tk), lambda i, j, k: (j, k)),
                pl.BlockSpec((1, tn), lambda i, j, k: (0, j)),
            ],
            out_specs=pl.BlockSpec((tm, tn), lambda i, j, k: (i, j)),
            scratch_shapes=[pltpu.VMEM((tm, tn), jnp.float32)],
        ),
        compiler_params=pltpu.CompilerParams(
            dimension_semantics=("parallel", "parallel", "arbitrary"),
            vmem_limit_bytes=_vmem_limit(vmem_est)),
        cost_estimate=cost,
    )(x, w, b2)


# ------------------------ fused layer-stack kernel -------------------------- #
def _fused_shard_kernel(x_ref, w_ref, b_ref, o_ref, act_ref):
    """grid = (M_tiles, L); activations stay resident in VMEM across layers."""
    l = pl.program_id(1)

    @pl.when(l == 0)
    def _():
        act_ref[...] = x_ref[...]

    # act: (tm, H), w: (H_out=H, H_in=H) -> contract last axes (no transpose).
    y = lax.dot_general(
        act_ref[...], w_ref[...],
        dimension_numbers=(((1,), (1,)), ((), ())),
        preferred_element_type=jnp.float32)
    y = y + b_ref[...]                      # f32 bias add, once per layer
    act_ref[...] = y.astype(act_ref.dtype)  # feed the next layer (stays in VMEM)

    @pl.when(l == pl.num_programs(1) - 1)
    def _():
        # Output block index is constant along the layer axis, so this tile is
        # resident and written back to HBM exactly once per row tile.
        o_ref[...] = y.astype(o_ref.dtype)


def fused_linear_stack_pallas(x, weights, biases, *, tm=256,
                              compute_dtype=None, out_dtype=None):
    """y = (((x @ W0.T + b0) @ W1.T + b1) ...) fused into one pallas_call.
    weights: (L, H, H), biases: (L, H)."""
    S, H = x.shape
    L = weights.shape[0]
    out_dtype = out_dtype or x.dtype
    cd = compute_dtype or x.dtype

    xc = x.astype(cd)
    wc = weights.astype(cd)
    b3 = biases.reshape(L, 1, H).astype(jnp.float32)

    tm = _pick_tile(S, tm, 8)
    grid = (S // tm, L)

    isz = jnp.dtype(cd).itemsize
    osz = jnp.dtype(out_dtype).itemsize
    cost = pl.CostEstimate(
        flops=int(2 * S * H * H * L),
        transcendentals=0,
        bytes_accessed=int(S * H * isz + L * H * H * isz
                           + L * H * 4 + S * H * osz))
    vmem_est = (2 * (tm * H + H * H) * isz      # double-buffered x tile + weight
                + 2 * H * 4                     # bias
                + 2 * tm * H * osz              # output tile
                + tm * H * isz                  # activation scratch
                + tm * H * 4)                   # f32 temporaries

    return pl.pallas_call(
        _fused_shard_kernel,
        out_shape=jax.ShapeDtypeStruct((S, H), out_dtype),
        grid_spec=pltpu.PrefetchScalarGridSpec(
            num_scalar_prefetch=0,
            grid=grid,
            in_specs=[
                pl.BlockSpec((tm, H), lambda m, l: (m, 0)),
                # Leading layer dim squeezed out: kernel sees (H, H) / (1, H).
                pl.BlockSpec((None, H, H), lambda m, l: (l, 0, 0)),
                pl.BlockSpec((None, 1, H), lambda m, l: (l, 0, 0)),
            ],
            out_specs=pl.BlockSpec((tm, H), lambda m, l: (m, 0)),
            scratch_shapes=[pltpu.VMEM((tm, H), cd)],
        ),
        compiler_params=pltpu.CompilerParams(
            dimension_semantics=("parallel", "arbitrary"),
            vmem_limit_bytes=_vmem_limit(vmem_est)),
        cost_estimate=cost,
    )(xc, wc, b3)


# ------------------------------ Shard module -------------------------------- #
def passthrough_arg_fn(output, args, kwargs):
    """Standard arg_fn: each layer's output becomes the next layer's sole arg."""
    return (output,), kwargs


class LinearLayer:
    """JAX analogue of nn.Linear; forward uses the tiled Pallas kernel."""

    def __init__(self, weight, bias, compute_dtype=None):
        self.weight = weight            # (H_out, H_in)
        self.bias = bias                # (H_out,)
        self.compute_dtype = compute_dtype

    def __call__(self, x):
        return linear_pallas(x, self.weight, self.bias,
                             compute_dtype=self.compute_dtype,
                             out_dtype=x.dtype)


# Per-layer weight double-buffer budget (at compute dtype) allowed for fusion;
# larger weights fall back to the K/N-tiled per-layer kernel.
_FUSE_WEIGHT_BUDGET_BYTES = 16 * 1024 * 1024


class Shard:
    """Faithful port of quip_sharp Shard.forward semantics, with a fused
    fast path when the stack is a homogeneous chain of square Linear layers."""

    def __init__(self, layers, arg_fn):
        self.layers = list(layers)
        self.arg_fn = arg_fn

    # ---- fused fast path -------------------------------------------------- #
    def _try_fused(self, args, kwargs):
        if self.arg_fn is not passthrough_arg_fn:
            return None
        if kwargs or len(args) != 1 or len(self.layers) == 0:
            return None
        if not all(isinstance(l, LinearLayer) for l in self.layers):
            return None
        x = args[0]
        if getattr(x, "ndim", None) != 2:
            return None
        H = x.shape[1]
        cd0 = self.layers[0].compute_dtype
        for l in self.layers:
            if l.weight.shape != (H, H) or l.compute_dtype != cd0:
                return None
        cd = cd0 or x.dtype
        if 2 * H * H * jnp.dtype(cd).itemsize > _FUSE_WEIGHT_BUDGET_BYTES:
            return None  # weight too big to hold per-layer; use tiled path
        w_stack = jnp.stack([l.weight for l in self.layers])   # (L, H, H)
        b_stack = jnp.stack([l.bias for l in self.layers])     # (L, H)
        y = fused_linear_stack_pallas(x, w_stack, b_stack,
                                      compute_dtype=cd0, out_dtype=x.dtype)
        return ((y,), {})

    # ---- generic path (exact PyTorch control flow) ------------------------ #
    def forward(self, *args, **kwargs):
        fused = self._try_fused(args, kwargs)
        if fused is not None:
            return fused
        for layer in self.layers:
            output = layer(*args, **kwargs)
            args, kwargs = self.arg_fn(output, args, kwargs)
        return (args, kwargs)

    __call__ = forward


# --------------------------------- main ------------------------------------ #
if __name__ == "__main__":
    key = jax.random.PRNGKey(0)
    S, H = 16, 32          # seq=16, hidden=32 (small shapes; tiles auto-clamp)
    n_layers = 3

    key, kx = jax.random.split(key)
    x = jax.random.normal(kx, (S, H), dtype=jnp.float32)

    params = []
    for _ in range(n_layers):
        key, kw, kb = jax.random.split(key, 3)
        w = jax.random.normal(kw, (H, H), dtype=jnp.float32) * 0.1
        b = jax.random.normal(kb, (H,), dtype=jnp.float32) * 0.1
        params.append((w, b))

    # -------- Run 1: fused kernel, full f32 (matches PyTorch numerics) ------ #
    layers_f32 = [LinearLayer(w, b, compute_dtype=None) for (w, b) in params]
    shard_f32 = Shard(layers_f32, passthrough_arg_fn)
    out_args, out_kwargs = shard_f32(x)
    y_f32 = out_args[0]
    jax.block_until_ready(y_f32)

    y_ref = x
    for w, b in params:
        y_ref = y_ref @ w.T + b

    assert y_f32.shape == (S, H) and y_f32.dtype == jnp.float32
    assert out_kwargs == {}
    assert jnp.allclose(y_f32, y_ref, atol=1e-4, rtol=1e-4), "fused f32 mismatch"

    # -------- Run 2: fused kernel, bf16 MXU inputs, f32 accumulation -------- #
    layers_bf = [LinearLayer(w, b, compute_dtype=jnp.bfloat16) for (w, b) in params]
    shard_bf = Shard(layers_bf, passthrough_arg_fn)
    out_args_bf, _ = shard_bf(x)
    y_bf = out_args_bf[0]
    jax.block_until_ready(y_bf)

    y_ref_bf = x
    for w, b in params:
        acc = jnp.dot(y_ref_bf.astype(jnp.bfloat16), w.astype(jnp.bfloat16).T,
                      preferred_element_type=jnp.float32)
        y_ref_bf = acc + b
    assert y_bf.dtype == jnp.float32
    assert jnp.allclose(y_bf, y_ref_bf, atol=2e-2, rtol=2e-2), "fused bf16 mismatch"

    # -------- Run 3: generic (non-fused) per-layer tiled kernel path -------- #
    def custom_arg_fn(output, args, kwargs):     # same semantics, not the sentinel
        return (output,), kwargs

    shard_generic = Shard(layers_f32, custom_arg_fn)
    out_args_g, out_kwargs_g = shard_generic(x)
    y_g = out_args_g[0]
    jax.block_until_ready(y_g)
    assert out_kwargs_g == {}
    assert jnp.allclose(y_g, y_ref, atol=1e-4, rtol=1e-4), "tiled per-layer mismatch"

    print("KERNEL_OK")
</pallas_src>

<mosaic_0001>
module attributes {stable_mosaic.version = 11 : i64} {
  func.func @_fused_shard_kernel(%arg0: i32, %arg1: i32, %arg2: memref<16x32xf32, #tpu.memory_space<vmem>>, %arg3: memref<1x32x32xf32, #tpu.memory_space<vmem>>, %arg4: memref<1x1x32xf32, #tpu.memory_space<vmem>>, %arg5: memref<16x32xf32, #tpu.memory_space<vmem>>, %arg6: memref<16x32xf32, #tpu.memory_space<vmem>>) attributes {dimension_semantics = [#tpu.dimension_semantics<parallel>, #tpu.dimension_semantics<arbitrary>], iteration_bounds = array<i64: 1, 3>, scalar_prefetch = 0 : i64, scratch_operands = 1 : i64, tpu.core_type = #tpu.core_type<tc>, window_params = [{transform_indices = @transform_0, window_bounds = array<i64: 16, 32>}, {transform_indices = @transform_1, window_bounds = array<i64: 1, 32, 32>}, {transform_indices = @transform_2, window_bounds = array<i64: 1, 1, 32>}, {transform_indices = @transform_3, window_bounds = array<i64: 16, 32>}]} {
    %c0_i32 = arith.constant 0 : i32
    %0 = arith.cmpi eq, %arg1, %c0_i32 : i32
    %1 = arith.extui %0 : i1 to i32
    %c0_i32_0 = arith.constant 0 : i32
    %2 = arith.cmpi ne, %1, %c0_i32_0 : i32
    scf.if %2 {
      %c0_11 = arith.constant 0 : index
      %c0_12 = arith.constant 0 : index
      %15 = vector.load %arg2[%c0_11, %c0_12] : memref<16x32xf32, #tpu.memory_space<vmem>>, vector<16x32xf32>
      %c0_13 = arith.constant 0 : index
      %c0_14 = arith.constant 0 : index
      %16 = vector.load %arg6[%c0_13, %c0_14] : memref<16x32xf32, #tpu.memory_space<vmem>>, vector<16x32xf32>
      tpu.vector_store %arg6[%c0_13, %c0_14], %15 {strides = array<i32>} : memref<16x32xf32, #tpu.memory_space<vmem>>, vector<16x32xf32>,
    } else {
    }
    %c0 = arith.constant 0 : index
    %c0_1 = arith.constant 0 : index
    %3 = vector.load %arg6[%c0, %c0_1] : memref<16x32xf32, #tpu.memory_space<vmem>>, vector<16x32xf32>
    %c0_2 = arith.constant 0 : index
    %c0_3 = arith.constant 0 : index
    %c0_4 = arith.constant 0 : index
    %4 = vector.load %arg3[%c0_2, %c0_3, %c0_4] : memref<1x32x32xf32, #tpu.memory_space<vmem>>, vector<1x32x32xf32>
    %5 = vector.shape_cast %4 : vector<1x32x32xf32> to vector<32x32xf32>
    %cst = arith.constant dense<0.000000e+00> : vector<16x32xf32>
    %6 = tpu.matmul %3, %5, %cst {dimension_numbers = #tpu.dot_dimension_numbers<[1], [1], [0], [0], [0, 0, 1, 0], [], []>} : vector<16x32xf32>, vector<32x32xf32>, vector<16x32xf32> -> vector<16x32xf32>
    %c0_5 = arith.constant 0 : index
    %c0_6 = arith.constant 0 : index
    %c0_7 = arith.constant 0 : index
    %7 = vector.load %arg4[%c0_5, %c0_6, %c0_7] : memref<1x1x32xf32, #tpu.memory_space<vmem>>, vector<1x1x32xf32>
    %8 = vector.shape_cast %7 : vector<1x1x32xf32> to vector<1x32xf32>
    %9 = vector.broadcast %8 : vector<1x32xf32> to vector<16x32xf32>
    %10 = arith.addf %6, %9 : vector<16x32xf32>
    %c0_8 = arith.constant 0 : index
    %c0_9 = arith.constant 0 : index
    %11 = vector.load %arg6[%c0_8, %c0_9] : memref<16x32xf32, #tpu.memory_space<vmem>>, vector<16x32xf32>
    tpu.vector_store %arg6[%c0_8, %c0_9], %10 {strides = array<i32>} : memref<16x32xf32, #tpu.memory_space<vmem>>, vector<16x32xf32>,
    %c2_i32 = arith.constant 2 : i32
    %12 = arith.cmpi eq, %arg1, %c2_i32 : i32
    %13 = arith.extui %12 : i1 to i32
    %c0_i32_10 = arith.constant 0 : i32
    %14 = arith.cmpi ne, %13, %c0_i32_10 : i32
    scf.if %14 {
      %c0_11 = arith.constant 0 : index
      %c0_12 = arith.constant 0 : index
      %15 = vector.load %arg5[%c0_11, %c0_12] : memref<16x32xf32, #tpu.memory_space<vmem>>, vector<16x32xf32>
      tpu.vector_store %arg5[%c0_11, %c0_12], %10 {strides = array<i32>} : memref<16x32xf32, #tpu.memory_space<vmem>>, vector<16x32xf32>,
    } else {
    }
    return
  }
  func.func @transform_0(%arg0: i32, %arg1: i32) -> (i32, i32) {
    %c0_i32 = arith.constant 0 : i32
    %c0_i32_0 = arith.constant 0 : i32
    return %arg0, %c0_i32 : i32, i32
  }
  func.func @transform_1(%arg0: i32, %arg1: i32) -> (i32, i32, i32) {
    %c0_i32 = arith.constant 0 : i32
    %c0_i32_0 = arith.constant 0 : i32
    %c0_i32_1 = arith.constant 0 : i32
    return %arg1, %c0_i32, %c0_i32_0 : i32, i32, i32
  }
  func.func @transform_2(%arg0: i32, %arg1: i32) -> (i32, i32, i32) {
    %c0_i32 = arith.constant 0 : i32
    %c0_i32_0 = arith.constant 0 : i32
    %c0_i32_1 = arith.constant 0 : i32
    return %arg1, %c0_i32, %c0_i32_0 : i32, i32, i32
  }
  func.func @transform_3(%arg0: i32, %arg1: i32) -> (i32, i32) {
    %c0_i32 = arith.constant 0 : i32
    %c0_i32_0 = arith.constant 0 : i32
    return %arg0, %c0_i32 : i32, i32
  }
}

</mosaic_0001>

<bundles_post_ra>
// kernel: tpu_custom_call.1
= control target key start
LH: loop header
LB: loop body
LE: loop exit
PB: predicated region body
PF: predicated region fallthrough
CT: control target
= control target key end

     0   :  { %8 = vsyncpa [#allocation4], 0  ;;  %s889_s0 = inlined_call_operand.hbm [shape: f32[16,32], index: 0, kind: input, shape index: {}]   ;;  %s890_s1 = inlined_call_operand.hbm [shape: f32[3,32,32], index: 1, kind: input, shape index: {}]   ;;  %s891_s2 = inlined_call_operand.hbm [shape: f32[3,1,32], index: 2, kind: input, shape index: {}]   ;;  %s892_s3 = inlined_call_operand.hbm [shape: f32[16,32], index: 3, kind: output, shape index: {}]  }
   0x1   :  { %9 = vsyncpa [#allocation7], 0 }
   0x2   :  { %11 = vsyncpa [#allocation7 + $0x1], 0 }
   0x3   :  { %12 = vsyncpa [#allocation5], 0  ;;  %s743_s12 = smov 0   ;;  %s745_s13 = smov 0  }
   0x4   :  { %s747_s14 = smov 0   ;;  %s749_s15 = smov 0  }
   0x5   :  { %s751_s16 = smov 0   ;;  %s753_s17 = smov 0  }
   0x6 LB: > { %s27_s18 = sadd.s32 1, %s711_s16  ;;  %s63_s19 = sadd.s32 1, %s703_s14  ;;  %s715_s17 = sphi %s753_s17, %s18_s17   ;;  %s711_s16 = sphi %s751_s16, %s901_s16   ;;  %s707_s15 = sphi %s749_s15, %s900_s15   ;;  %s703_s14 = sphi %s747_s14, %s899_s14   ;;  %s699_s13 = sphi %s745_s13, %s898_s13   ;;  %s695_s12 = sphi %s743_s12, %s897_s12  }
   0x7   : > { %p28_p0 = scmp.ge.s32.totalorder %s27_s18, 3  ;;  %p70_p1 = scmp.ne.s32.totalorder %s703_s14, %s699_s13 }
   0x8   : > { %p71_p2 = scmp.eq.s32.totalorder %s715_s17, 0  ;;  %p480_p5 = scmp.lt.s32.totalorder %s715_s17, 3 }
   0x9   : > { %s903_s18 = smov (%p28_p0, %s27_s18), 0  ;;  %s169_s22 = sand.u32 1, %s715_s17  }
   0xa   : > { %p780_p3 = por %p71_p2, %p70_p1  ;;  %s60_s21 = ssub.s32 %s711_s16, %s903_s18 }
   0xb   : > { %p61_p4 = scmp.eq.s32.totalorder %s60_s21, 0  ;;  %s171_s23 = sand.u32 1, %s703_s14  }
   0xc   : > { %s433_s25 = sshll.u32 %s171_s23, 5  ;;  %s451_s26 = sshll.u32 %s711_s16, 5 }
   0xd   : > { %s790_s24 = scalar_select %p61_p4, %s703_s14, %s63_s19  }
   0xe   : > { %s178_s29 = scalar_lea.hbm %s890_s1, %s451_s26  ;;  %s173_s30 = scalar_lea.vmem [#allocation6], %s433_s25 }
   0xf   : > { %s181_s4 = sshll.u32 %s173_s30, 4  ;;  %s179_s5 = sshll.u32 %s178_s29, 4  ;;  %s182_s4 = int_to_ptr.vmem [resolvable:$true] %s181_s4  ;;  %s180_s5 = int_to_ptr.hbm [resolvable:$true] %s179_s5 }
  0x10   : > { %p800_p6 = pnand %p480_p5, %p780_p3  ;;  %s170_s7 = scalar_lea.sflag [#allocation7], %s169_s22 }
  0x11   : > { %s717_s8 = smov 128   ;;  %s718_s9 = smov 8  }
  0x12   : > { %475 = dma.hbm_to_vmem [thread:$0]  (!%p800_p6), %s180_s5, 512, %s182_s4, %s170_s7, %s717_s8, %s717_s8, %s718_s9  }
  0x13   : > { %s807_s10 = sadd.s32 4294967295, %s715_s17   ;;  %p76_p7 = scmp.ne.s32.totalorder %s699_s13, %s695_s12 }
  0x14   : > { %p77_p8 = scmp.eq.s32.totalorder %s807_s10, 0  ;;  %p430_p9 = scmp.ge.s32.totalorder %s715_s17, 1 }
  0x15   : > { %p139_p10 = scmp.lt.s32.totalorder %s715_s17, 4  ;;  %s153_s22 = sshll.u32 %s889_s0, 4  ;;  %s154_s22 = int_to_ptr.hbm [resolvable:$true] %s153_s22 }
  0x16   : > { %p816_p11 = por %p77_p8, %p76_p7  ;;  %s719_s12 = smov [#allocation3]  }
  0x17   : > { %p820_p12 = pnand %p430_p9, %p139_p10  ;;  %s155_s25 = sshll.u32 %s719_s12, 4  ;;  %s156_s25 = int_to_ptr.vmem [resolvable:$true] %s155_s25 }
  0x18   : > { %s197_s28 = scalar_lea.hbm %s891_s2, %s711_s16  ;;  %s194_s30 = scalar_lea.vmem [#allocation8], %s171_s23 }
  0x19   : > { %p468_p13 = pneg %p820_p12  ;;  %s199_s29 = sshll.u32 %s197_s28, 4  ;;  %s200_s29 = int_to_ptr.hbm [resolvable:$true] %s199_s29 }
  0x1a   : > { %s201_s4 = sshll.u32 %s194_s30, 4  ;;  %210 = sbr.rel (%p820_p12) target bundleno = 200 (0xc8), region = 32  ;;  %s202_s4 = int_to_ptr.vmem [resolvable:$true] %s201_s4 }
  0x1b   : > { %p469_p0 = pnand %p468_p13, %p77_p8 }
  0x1c   : > { %478 = dma.hbm_to_vmem [thread:$0]  (!%p800_p6), %s200_s29, 16, %s202_s4, %s170_s7  }
  0x1d   : > { %471 = dma.hbm_to_vmem [thread:$0]  (!%p469_p0), %s154_s22, 256, %s156_s25, [#allocation4], %s717_s8, %s717_s8, %s718_s9  }
  0x1f   : > { %682 = dma.done.wait (%p77_p8), [#allocation4], 256  }
  0x20   : > { %684 = vsyncadd (%p77_p8), [#allocation4], 4294967040  ;;  %s217_s5 = sand.u32 1, %s807_s10   ;;  %s219_s23 = sand.u32 1, %s699_s13  }
  0x21   : > { %s438_s20 = sshll.u32 %s219_s23, 5  ;;  %s218_s21 = scalar_lea.sflag [#allocation7], %s217_s5 }
  0x22   : > { %s221_s8 = scalar_lea.vmem [#allocation6], %s438_s20 }
  0x23   : > { %686 = dma.done.wait (%p816_p11), %s218_s21, 528  }
  0x24   : > { %688 = vsyncadd (%p816_p11), %s218_s21, 4294966768  ;;  %s230_s6 = scalar_lea.vmem [#allocation8], %s219_s23  ;;  %p439_p1 = scmp.ne.s32.totalorder %s707_s15, 0 }
  0x26   : > { %258 = sbr.rel (%p439_p1) target bundleno = 46 (0x2e), region = 48 }
  0x2b   : > { %v259_v0 = vld [vmem:[#allocation3] sm:$0xff]  ;;  %vm261_vm0 = vcmask 261120   ;;  %v260_v1 = vld [vmem:[#allocation3 + $0x8] sm:$0xff] }
  0x2c   : > { %262 = vst.msk [vmem:[#allocation2] sm:$0xff] %vm261_vm0, %v259_v0 }
  0x2d   : > { %263 = vst.msk [vmem:[#allocation2 + $0x8] sm:$0xff] %vm261_vm0, %v260_v1 }
  0x2e PF: > { %v269_v2 = vld [vmem:[%s221_s8 + $0x18] sm:$0xff]  ;;  %vm274_vm1 = vcmask 261120   ;;  %v268_v3 = vld [vmem:[%s221_s8 + $0x10] sm:$0xff]  ;;  %v267_v4 = vld [vmem:[%s221_s8 + $0x8] sm:$0xff]  ;;  %p446_p2 = scmp.ne.s32.totalorder %s707_s15, 2 }
  0x2f   : > { %440 = vmatpush.xpose.msk.msra.mxu0 %vm274_vm1, %v269_v2  ;;  %452 = vmatpush.xpose.msk.msra.mxu1 %vm274_vm1, %v269_v2  ;;  %v266_v5 = vld [vmem:[%s221_s8] sm:$0xff] }
  0x30   : > { %v538_v8 = vld [vmem:[%s230_s6] ss:$0 sm:$0xff] }
  0x33   : > { %441 = vmatpush.xpose.msk.msra.mxu0 %vm274_vm1, %v268_v3  ;;  %453 = vmatpush.xpose.msk.msra.mxu1 %vm274_vm1, %v268_v3  ;;  %v264_v6 = vld [vmem:[#allocation2] sm:$0xff] }
  0x34   : > { %v265_v7 = vld [vmem:[#allocation2 + $0x8] sm:$0xff] }
  0x37   : > { %442 = vmatpush.xpose.msk.msra.mxu0 %vm274_vm1, %v267_v4  ;;  %454 = vmatpush.xpose.msk.msra.mxu1 %vm274_vm1, %v267_v4 }
  0x3b   : > { %443 = vmatpush.xpose.msk.msra.mxu0 %vm274_vm1, %v266_v5  ;;  %455 = vmatpush.xpose.msk.msra.mxu1 %vm274_vm1, %v266_v5 }
  0x3e   : > { %444 = vmatmul.msk.f32.vlgmr.msra.gmra.mxu0 %vm274_vm1, %v264_v6  ;;  %445 = vmatmul.msk.f32.vlgmr.msra.gmra.mxu1 %vm274_vm1, %v265_v7 }
  0xbb   : > { %v310_v9 = vpop.f32.mrf.mxu0  ;;  %v313_v10 = vpop.f32.mrf.mxu1  ;;  %321 = sbr.rel (%p446_p2) target bundleno = 194 (0xc2), region = 52 }
  0xbc   : > { %v311_v11 = vadd.f32 %v538_v8, %v310_v9  ;;  %v314_v12 = vadd.f32 %v538_v8, %v313_v10 }
  0xbe   : > { %316 = vst.msk [vmem:[#allocation2] sm:$0xff] %vm274_vm1, %v311_v11 }
  0xbf   : > { %317 = vst.msk [vmem:[#allocation2 + $0x8] sm:$0xff] %vm274_vm1, %v314_v12 }
  0xc0   : > { %322 = vst.msk [vmem:[#allocation9] sm:$0xff] %vm274_vm1, %v311_v11 }
  0xc1   : > { %323 = vst.msk [vmem:[#allocation9 + $0x8] sm:$0xff] %vm274_vm1, %v314_v12 }
  0xc2 PF: > { %p482_p3 = scmp.eq.s32.totalorder %s807_s10, 2  ;;  %s334_s11 = sshll.u32 %s892_s3, 4  ;;  %s335_s11 = int_to_ptr.hbm [resolvable:$true] %s334_s11 }
  0xc3   : > { %s720_s19 = smov [#allocation9]   ;;  %s721_s12 = smov 128  }
  0xc4   : > { %s332_s22 = sshll.u32 %s720_s19, 4  ;;  %s722_s25 = smov 8   ;;  %s333_s22 = int_to_ptr.vmem [resolvable:$true] %s332_s22 }
  0xc5   : > { %465 = dma.vmem_to_hbm [thread:$0]  (%p482_p3), %s333_s22, 256, %s335_s11, [#allocation5], %s721_s12, %s721_s12, %s722_s25  }
  0xc6   : > { %690 = dma.done.wait (%p482_p3), [#allocation5], 256  }
  0xc7   : > { %692 = vsyncadd (%p482_p3), [#allocation5], 4294967040 }
  0xc8 PF: > { %s18_s17 = sadd.s32 1, %s715_s17   ;;  %s897_s12 = smov %s699_s13 }
  0xc9   : > { %p15_p4 = scmp.ge.s32.totalorder %s18_s17, 5   ;;  %s898_s13 = smov %s703_s14 }
  0xca   : > { %s899_s14 = smov %s790_s24  ;;  %s900_s15 = smov %s711_s16 }
  0xcb   : > { %s901_s16 = smov %s903_s18  ;;  %17 = sbr.rel (!%p15_p4) target bundleno = 6 (0x6), region = 95 }
  0xd0   :  { %351 = vsyncpa [#allocation4], 1 }
  0xd1   :  { %353 = vsyncpa [#allocation4 + $0x1], 1 }
  0xd2   :  { %354 = vsyncpa [#allocation7], 1 }
  0xd3   :  { %356 = vsyncpa [#allocation7 + $0x1], 1 }
  0xd4   :  { %357 = vsyncpa [#allocation5], 1 }
  0xd5   :  { %359 = vsyncpa [#allocation5 + $0x1], 1 }

</bundles_post_ra>
